<compile_context>
chip_gen: v7x
topology: tpu7x:2x2x1
jax: 0.10.0
libtpu: 0.0.40
codegen_flags: <defaults>
</compile_context>

<pallas_src>
import functools
import math

import jax
import jax.numpy as jnp
from jax import lax
from jax.experimental import pallas as pl
from jax.experimental.pallas import tpu as pltpu


# ------------------------------- Pallas kernel ------------------------------ #

def _mha_kernel(x_ref, wqkv_ref, bqkv_ref, wo_ref, bo_ref, o_ref, *,
                num_heads, head_size):
    # x_ref   : (S, H)        one batch element
    # wqkv_ref: (H, 3H)       fused q/k/v projection weights
    # bqkv_ref: (1, 3H)
    # wo_ref  : (H, H)        output projection
    # bo_ref  : (1, H)
    # o_ref   : (S, H)
    S, H = x_ref.shape
    scale = 1.0 / math.sqrt(head_size)

    x = x_ref[...].astype(jnp.float32)

    # Fused Q/K/V projection: one MXU matmul with K=H, N=3H.
    qkv = jnp.dot(x, wqkv_ref[...], preferred_element_type=jnp.float32)
    qkv = qkv + bqkv_ref[...]                         # (S, 3H)
    q = qkv[:, 0 * H:1 * H]
    k = qkv[:, 1 * H:2 * H]
    v = qkv[:, 2 * H:3 * H]

    # Per-head scaled-dot-product attention (heads unrolled; static lane slices).
    nt_dims = (((1,), (1,)), ((), ()))                # contract last dim of both
    ctx_parts = []
    for h in range(num_heads):
        sl = slice(h * head_size, (h + 1) * head_size)
        q_h = q[:, sl]                                # (S, hd)
        k_h = k[:, sl]
        v_h = v[:, sl]
        # scores = q_h @ k_h^T
        s = lax.dot_general(q_h, k_h, nt_dims,
                            preferred_element_type=jnp.float32) * scale
        # numerically-stable softmax along keys
        s = s - jnp.max(s, axis=-1, keepdims=True)
        p = jnp.exp(s)
        p = p / jnp.sum(p, axis=-1, keepdims=True)
        # TODO(synk): attn_dropout treated as identity (inference / eval mode).
        ctx_parts.append(jnp.dot(p, v_h, preferred_element_type=jnp.float32))

    ctx = jnp.concatenate(ctx_parts, axis=-1)         # (S, H)  merged heads

    out = jnp.dot(ctx, wo_ref[...], preferred_element_type=jnp.float32)
    out = out + bo_ref[...]
    # TODO(synk): proj_dropout treated as identity (inference / eval mode).
    o_ref[...] = out.astype(o_ref.dtype)


# ------------------------------- host wrappers ------------------------------ #

def mha_pallas(x, wqkv, bqkv, wo, bo, *, num_heads):
    B, S, H = x.shape
    head_size = H // num_heads
    kernel = functools.partial(_mha_kernel, num_heads=num_heads,
                               head_size=head_size)
    return pl.pallas_call(
        kernel,
        out_shape=jax.ShapeDtypeStruct((B, S, H), x.dtype),
        grid=(B,),
        in_specs=[
            pl.BlockSpec((None, S, H), lambda b: (b, 0, 0)),   # x (per batch)
            pl.BlockSpec((H, 3 * H), lambda b: (0, 0)),        # wqkv
            pl.BlockSpec((1, 3 * H), lambda b: (0, 0)),        # bqkv
            pl.BlockSpec((H, H), lambda b: (0, 0)),            # wo
            pl.BlockSpec((1, H), lambda b: (0, 0)),            # bo
        ],
        out_specs=pl.BlockSpec((None, S, H), lambda b: (b, 0, 0)),
        compiler_params=pltpu.CompilerParams(
            dimension_semantics=("parallel",)),
    )(x, wqkv, bqkv, wo, bo)


@functools.partial(jax.jit, static_argnames=("num_heads",))
def mha_forward(x, wq, bq, wk, bk, wv, bv, wo, bo, *, num_heads):
    """MultiHeadAttention.forward (inference): x (B,S,H) -> (B,S,H)."""
    wqkv = jnp.concatenate([wq, wk, wv], axis=-1)                 # (H, 3H)
    bqkv = jnp.concatenate([bq, bk, bv], axis=-1).reshape(1, -1)  # (1, 3H)
    return mha_pallas(x, wqkv, bqkv, wo, bo.reshape(1, -1), num_heads=num_heads)


# ----------------------------- pure-JAX reference --------------------------- #

def mha_reference(x, wq, bq, wk, bk, wv, bv, wo, bo, *, num_heads):
    B, S, H = x.shape
    hd = H // num_heads
    hp = lax.Precision.HIGHEST
    q = jnp.einsum("bsh,hd->bsd", x, wq, precision=hp) + bq
    k = jnp.einsum("bsh,hd->bsd", x, wk, precision=hp) + bk
    v = jnp.einsum("bsh,hd->bsd", x, wv, precision=hp) + bv

    def split(t):  # (B,S,H) -> (B,nh,S,hd)
        return t.reshape(B, S, num_heads, hd).transpose(0, 2, 1, 3)

    qh, kh, vh = split(q), split(k), split(v)
    scores = jnp.einsum("bhqd,bhkd->bhqk", qh, kh, precision=hp) / math.sqrt(hd)
    probs = jax.nn.softmax(scores, axis=-1)
    ctx = jnp.einsum("bhqk,bhkd->bhqd", probs, vh, precision=hp)
    ctx = ctx.transpose(0, 2, 1, 3).reshape(B, S, H)
    return jnp.einsum("bsh,ho->bso", ctx, wo, precision=hp) + bo


# ------------------------------------ main ----------------------------------- #

if __name__ == "__main__":
    # Module config: hidden_size=128, num_heads=4 (head_size=32); batch=2, seq=16.
    B, S, H, NH = 2, 16, 128, 4

    key = jax.random.PRNGKey(0)
    kx, kq, kk, kv, ko, kbq, kbk, kbv, kbo = jax.random.split(key, 9)

    scale = 1.0 / math.sqrt(H)
    x = jax.random.normal(kx, (B, S, H), jnp.float32)
    wq = jax.random.normal(kq, (H, H), jnp.float32) * scale
    wk = jax.random.normal(kk, (H, H), jnp.float32) * scale
    wv = jax.random.normal(kv, (H, H), jnp.float32) * scale
    wo = jax.random.normal(ko, (H, H), jnp.float32) * scale
    bq = jax.random.normal(kbq, (H,), jnp.float32) * scale
    bk = jax.random.normal(kbk, (H,), jnp.float32) * scale
    bv = jax.random.normal(kbv, (H,), jnp.float32) * scale
    bo = jax.random.normal(kbo, (H,), jnp.float32) * scale

    out = jax.block_until_ready(
        mha_forward(x, wq, bq, wk, bk, wv, bv, wo, bo, num_heads=NH))
    ref = jax.block_until_ready(
        mha_reference(x, wq, bq, wk, bk, wv, bv, wo, bo, num_heads=NH))

    assert out.shape == (B, S, H), out.shape
    max_err = float(jnp.max(jnp.abs(out - ref)))
    assert jnp.allclose(out, ref, rtol=1e-3, atol=1e-4), max_err
    print("KERNEL_OK")
</pallas_src>

<mosaic_0001>
module attributes {stable_mosaic.version = 11 : i64} {
  func.func @_mha_kernel(%arg0: i32, %arg1: memref<1x16x128xf32, #tpu.memory_space<vmem>>, %arg2: memref<128x384xf32, #tpu.memory_space<vmem>>, %arg3: memref<1x384xf32, #tpu.memory_space<vmem>>, %arg4: memref<128x128xf32, #tpu.memory_space<vmem>>, %arg5: memref<1x128xf32, #tpu.memory_space<vmem>>, %arg6: memref<1x16x128xf32, #tpu.memory_space<vmem>>) attributes {dimension_semantics = [#tpu.dimension_semantics<parallel>], iteration_bounds = array<i64: 2>, scalar_prefetch = 0 : i64, scratch_operands = 0 : i64, tpu.core_type = #tpu.core_type<tc>, window_params = [{transform_indices = @transform_0, window_bounds = array<i64: 1, 16, 128>}, {pipeline_mode = #tpu.pipeline_mode<synchronous>, transform_indices = @transform_1, window_bounds = array<i64: 128, 384>}, {pipeline_mode = #tpu.pipeline_mode<synchronous>, transform_indices = @transform_2, window_bounds = array<i64: 1, 384>}, {pipeline_mode = #tpu.pipeline_mode<synchronous>, transform_indices = @transform_3, window_bounds = array<i64: 128, 128>}, {pipeline_mode = #tpu.pipeline_mode<synchronous>, transform_indices = @transform_4, window_bounds = array<i64: 1, 128>}, {transform_indices = @transform_5, window_bounds = array<i64: 1, 16, 128>}]} {
    %c0 = arith.constant 0 : index
    %c0_0 = arith.constant 0 : index
    %c0_1 = arith.constant 0 : index
    %0 = vector.load %arg1[%c0, %c0_0, %c0_1] : memref<1x16x128xf32, #tpu.memory_space<vmem>>, vector<1x16x128xf32>
    %1 = vector.shape_cast %0 : vector<1x16x128xf32> to vector<16x128xf32>
    %c0_2 = arith.constant 0 : index
    %c0_3 = arith.constant 0 : index
    %2 = vector.load %arg2[%c0_2, %c0_3] : memref<128x384xf32, #tpu.memory_space<vmem>>, vector<128x384xf32>
    %cst = arith.constant dense<0.000000e+00> : vector<16x384xf32>
    %3 = tpu.matmul %1, %2, %cst {dimension_numbers = #tpu.dot_dimension_numbers<[1], [0], [0], [1], [0, 0, 1, 1], [], []>} : vector<16x128xf32>, vector<128x384xf32>, vector<16x384xf32> -> vector<16x384xf32>
    %c0_4 = arith.constant 0 : index
    %c0_5 = arith.constant 0 : index
    %4 = vector.load %arg3[%c0_4, %c0_5] : memref<1x384xf32, #tpu.memory_space<vmem>>, vector<1x384xf32>
    %5 = vector.broadcast %4 : vector<1x384xf32> to vector<16x384xf32>
    %6 = arith.addf %3, %5 : vector<16x384xf32>
    %7 = vector.extract_strided_slice %6 {offsets = [0, 0], sizes = [16, 128], strides = [1, 1]} : vector<16x384xf32> to vector<16x128xf32>
    %8 = vector.extract_strided_slice %6 {offsets = [0, 128], sizes = [16, 128], strides = [1, 1]} : vector<16x384xf32> to vector<16x128xf32>
    %9 = vector.extract_strided_slice %6 {offsets = [0, 256], sizes = [16, 128], strides = [1, 1]} : vector<16x384xf32> to vector<16x128xf32>
    %10 = vector.extract_strided_slice %7 {offsets = [0, 0], sizes = [16, 32], strides = [1, 1]} : vector<16x128xf32> to vector<16x32xf32>
    %11 = vector.extract_strided_slice %8 {offsets = [0, 0], sizes = [16, 32], strides = [1, 1]} : vector<16x128xf32> to vector<16x32xf32>
    %12 = vector.extract_strided_slice %9 {offsets = [0, 0], sizes = [16, 32], strides = [1, 1]} : vector<16x128xf32> to vector<16x32xf32>
    %cst_6 = arith.constant dense<0.000000e+00> : vector<16x16xf32>
    %13 = tpu.matmul %10, %11, %cst_6 {dimension_numbers = #tpu.dot_dimension_numbers<[1], [1], [0], [0], [0, 0, 1, 0], [], []>} : vector<16x32xf32>, vector<16x32xf32>, vector<16x16xf32> -> vector<16x16xf32>
    %cst_7 = arith.constant 0.176776692 : f32
    %14 = vector.broadcast %cst_7 : f32 to vector<16x16xf32>
    %15 = arith.mulf %13, %14 : vector<16x16xf32>
    %cst_8 = arith.constant dense<0xFF800000> : vector<16xf32>
    %16 = vector.multi_reduction <maximumf>, %15, %cst_8 [1] : vector<16x16xf32> to vector<16xf32>
    %17 = vector.shape_cast %16 : vector<16xf32> to vector<16x1xf32>
    %18 = vector.broadcast %17 : vector<16x1xf32> to vector<16x16xf32>
    %19 = arith.subf %15, %18 : vector<16x16xf32>
    %20 = math.exp %19 : vector<16x16xf32>
    %cst_9 = arith.constant dense<0.000000e+00> : vector<16xf32>
    %21 = vector.multi_reduction <add>, %20, %cst_9 [1] : vector<16x16xf32> to vector<16xf32>
    %22 = vector.shape_cast %21 : vector<16xf32> to vector<16x1xf32>
    %23 = vector.broadcast %22 : vector<16x1xf32> to vector<16x16xf32>
    %24 = arith.divf %20, %23 : vector<16x16xf32>
    %cst_10 = arith.constant dense<0.000000e+00> : vector<16x32xf32>
    %25 = tpu.matmul %24, %12, %cst_10 {dimension_numbers = #tpu.dot_dimension_numbers<[1], [0], [0], [1], [0, 0, 1, 1], [], []>} : vector<16x16xf32>, vector<16x32xf32>, vector<16x32xf32> -> vector<16x32xf32>
    %26 = vector.extract_strided_slice %7 {offsets = [0, 32], sizes = [16, 32], strides = [1, 1]} : vector<16x128xf32> to vector<16x32xf32>
    %27 = vector.extract_strided_slice %8 {offsets = [0, 32], sizes = [16, 32], strides = [1, 1]} : vector<16x128xf32> to vector<16x32xf32>
    %28 = vector.extract_strided_slice %9 {offsets = [0, 32], sizes = [16, 32], strides = [1, 1]} : vector<16x128xf32> to vector<16x32xf32>
    %cst_11 = arith.constant dense<0.000000e+00> : vector<16x16xf32>
    %29 = tpu.matmul %26, %27, %cst_11 {dimension_numbers = #tpu.dot_dimension_numbers<[1], [1], [0], [0], [0, 0, 1, 0], [], []>} : vector<16x32xf32>, vector<16x32xf32>, vector<16x16xf32> -> vector<16x16xf32>
    %cst_12 = arith.constant 0.176776692 : f32
    %30 = vector.broadcast %cst_12 : f32 to vector<16x16xf32>
    %31 = arith.mulf %29, %30 : vector<16x16xf32>
    %cst_13 = arith.constant dense<0xFF800000> : vector<16xf32>
    %32 = vector.multi_reduction <maximumf>, %31, %cst_13 [1] : vector<16x16xf32> to vector<16xf32>
    %33 = vector.shape_cast %32 : vector<16xf32> to vector<16x1xf32>
    %34 = vector.broadcast %33 : vector<16x1xf32> to vector<16x16xf32>
    %35 = arith.subf %31, %34 : vector<16x16xf32>
    %36 = math.exp %35 : vector<16x16xf32>
    %cst_14 = arith.constant dense<0.000000e+00> : vector<16xf32>
    %37 = vector.multi_reduction <add>, %36, %cst_14 [1] : vector<16x16xf32> to vector<16xf32>
    %38 = vector.shape_cast %37 : vector<16xf32> to vector<16x1xf32>
    %39 = vector.broadcast %38 : vector<16x1xf32> to vector<16x16xf32>
    %40 = arith.divf %36, %39 : vector<16x16xf32>
    %cst_15 = arith.constant dense<0.000000e+00> : vector<16x32xf32>
    %41 = tpu.matmul %40, %28, %cst_15 {dimension_numbers = #tpu.dot_dimension_numbers<[1], [0], [0], [1], [0, 0, 1, 1], [], []>} : vector<16x16xf32>, vector<16x32xf32>, vector<16x32xf32> -> vector<16x32xf32>
    %42 = vector.extract_strided_slice %7 {offsets = [0, 64], sizes = [16, 32], strides = [1, 1]} : vector<16x128xf32> to vector<16x32xf32>
    %43 = vector.extract_strided_slice %8 {offsets = [0, 64], sizes = [16, 32], strides = [1, 1]} : vector<16x128xf32> to vector<16x32xf32>
    %44 = vector.extract_strided_slice %9 {offsets = [0, 64], sizes = [16, 32], strides = [1, 1]} : vector<16x128xf32> to vector<16x32xf32>
    %cst_16 = arith.constant dense<0.000000e+00> : vector<16x16xf32>
    %45 = tpu.matmul %42, %43, %cst_16 {dimension_numbers = #tpu.dot_dimension_numbers<[1], [1], [0], [0], [0, 0, 1, 0], [], []>} : vector<16x32xf32>, vector<16x32xf32>, vector<16x16xf32> -> vector<16x16xf32>
    %cst_17 = arith.constant 0.176776692 : f32
    %46 = vector.broadcast %cst_17 : f32 to vector<16x16xf32>
    %47 = arith.mulf %45, %46 : vector<16x16xf32>
    %cst_18 = arith.constant dense<0xFF800000> : vector<16xf32>
    %48 = vector.multi_reduction <maximumf>, %47, %cst_18 [1] : vector<16x16xf32> to vector<16xf32>
    %49 = vector.shape_cast %48 : vector<16xf32> to vector<16x1xf32>
    %50 = vector.broadcast %49 : vector<16x1xf32> to vector<16x16xf32>
    %51 = arith.subf %47, %50 : vector<16x16xf32>
    %52 = math.exp %51 : vector<16x16xf32>
    %cst_19 = arith.constant dense<0.000000e+00> : vector<16xf32>
    %53 = vector.multi_reduction <add>, %52, %cst_19 [1] : vector<16x16xf32> to vector<16xf32>
    %54 = vector.shape_cast %53 : vector<16xf32> to vector<16x1xf32>
    %55 = vector.broadcast %54 : vector<16x1xf32> to vector<16x16xf32>
    %56 = arith.divf %52, %55 : vector<16x16xf32>
    %cst_20 = arith.constant dense<0.000000e+00> : vector<16x32xf32>
    %57 = tpu.matmul %56, %44, %cst_20 {dimension_numbers = #tpu.dot_dimension_numbers<[1], [0], [0], [1], [0, 0, 1, 1], [], []>} : vector<16x16xf32>, vector<16x32xf32>, vector<16x32xf32> -> vector<16x32xf32>
    %58 = vector.extract_strided_slice %7 {offsets = [0, 96], sizes = [16, 32], strides = [1, 1]} : vector<16x128xf32> to vector<16x32xf32>
    %59 = vector.extract_strided_slice %8 {offsets = [0, 96], sizes = [16, 32], strides = [1, 1]} : vector<16x128xf32> to vector<16x32xf32>
    %60 = vector.extract_strided_slice %9 {offsets = [0, 96], sizes = [16, 32], strides = [1, 1]} : vector<16x128xf32> to vector<16x32xf32>
    %cst_21 = arith.constant dense<0.000000e+00> : vector<16x16xf32>
    %61 = tpu.matmul %58, %59, %cst_21 {dimension_numbers = #tpu.dot_dimension_numbers<[1], [1], [0], [0], [0, 0, 1, 0], [], []>} : vector<16x32xf32>, vector<16x32xf32>, vector<16x16xf32> -> vector<16x16xf32>
    %cst_22 = arith.constant 0.176776692 : f32
    %62 = vector.broadcast %cst_22 : f32 to vector<16x16xf32>
    %63 = arith.mulf %61, %62 : vector<16x16xf32>
    %cst_23 = arith.constant dense<0xFF800000> : vector<16xf32>
    %64 = vector.multi_reduction <maximumf>, %63, %cst_23 [1] : vector<16x16xf32> to vector<16xf32>
    %65 = vector.shape_cast %64 : vector<16xf32> to vector<16x1xf32>
    %66 = vector.broadcast %65 : vector<16x1xf32> to vector<16x16xf32>
    %67 = arith.subf %63, %66 : vector<16x16xf32>
    %68 = math.exp %67 : vector<16x16xf32>
    %cst_24 = arith.constant dense<0.000000e+00> : vector<16xf32>
    %69 = vector.multi_reduction <add>, %68, %cst_24 [1] : vector<16x16xf32> to vector<16xf32>
    %70 = vector.shape_cast %69 : vector<16xf32> to vector<16x1xf32>
    %71 = vector.broadcast %70 : vector<16x1xf32> to vector<16x16xf32>
    %72 = arith.divf %68, %71 : vector<16x16xf32>
    %cst_25 = arith.constant dense<0.000000e+00> : vector<16x32xf32>
    %73 = tpu.matmul %72, %60, %cst_25 {dimension_numbers = #tpu.dot_dimension_numbers<[1], [0], [0], [1], [0, 0, 1, 1], [], []>} : vector<16x16xf32>, vector<16x32xf32>, vector<16x32xf32> -> vector<16x32xf32>
    %74 = tpu.concatenate %25, %41, %57, %73 in 1 : vector<16x32xf32>, vector<16x32xf32>, vector<16x32xf32>, vector<16x32xf32> -> vector<16x128xf32>
    %c0_26 = arith.constant 0 : index
    %c0_27 = arith.constant 0 : index
    %75 = vector.load %arg4[%c0_26, %c0_27] : memref<128x128xf32, #tpu.memory_space<vmem>>, vector<128x128xf32>
    %cst_28 = arith.constant dense<0.000000e+00> : vector<16x128xf32>
    %76 = tpu.matmul %74, %75, %cst_28 {dimension_numbers = #tpu.dot_dimension_numbers<[1], [0], [0], [1], [0, 0, 1, 1], [], []>} : vector<16x128xf32>, vector<128x128xf32>, vector<16x128xf32> -> vector<16x128xf32>
    %c0_29 = arith.constant 0 : index
    %c0_30 = arith.constant 0 : index
    %77 = vector.load %arg5[%c0_29, %c0_30] : memref<1x128xf32, #tpu.memory_space<vmem>>, vector<1x128xf32>
    %78 = vector.broadcast %77 : vector<1x128xf32> to vector<16x128xf32>
    %79 = arith.addf %76, %78 : vector<16x128xf32>
    %c0_31 = arith.constant 0 : index
    %c0_32 = arith.constant 0 : index
    %c0_33 = arith.constant 0 : index
    %80 = vector.load %arg6[%c0_31, %c0_32, %c0_33] : memref<1x16x128xf32, #tpu.memory_space<vmem>>, vector<1x16x128xf32>
    %81 = vector.shape_cast %80 : vector<1x16x128xf32> to vector<16x128xf32>
    %82 = vector.shape_cast %79 : vector<16x128xf32> to vector<1x16x128xf32>
    tpu.vector_store %arg6[%c0_31, %c0_32, %c0_33], %82 {strides = array<i32>} : memref<1x16x128xf32, #tpu.memory_space<vmem>>, vector<1x16x128xf32>,
    return
  }
  func.func @transform_0(%arg0: i32) -> (i32, i32, i32) {
    %c0_i32 = arith.constant 0 : i32
    %c0_i32_0 = arith.constant 0 : i32
    %c0_i32_1 = arith.constant 0 : i32
    return %arg0, %c0_i32, %c0_i32_0 : i32, i32, i32
  }
  func.func @transform_1(%arg0: i32) -> (i32, i32) {
    %c0_i32 = arith.constant 0 : i32
    %c0_i32_0 = arith.constant 0 : i32
    %c0_i32_1 = arith.constant 0 : i32
    return %c0_i32, %c0_i32_0 : i32, i32
  }
  func.func @transform_2(%arg0: i32) -> (i32, i32) {
    %c0_i32 = arith.constant 0 : i32
    %c0_i32_0 = arith.constant 0 : i32
    %c0_i32_1 = arith.constant 0 : i32
    return %c0_i32, %c0_i32_0 : i32, i32
  }
  func.func @transform_3(%arg0: i32) -> (i32, i32) {
    %c0_i32 = arith.constant 0 : i32
    %c0_i32_0 = arith.constant 0 : i32
    %c0_i32_1 = arith.constant 0 : i32
    return %c0_i32, %c0_i32_0 : i32, i32
  }
  func.func @transform_4(%arg0: i32) -> (i32, i32) {
    %c0_i32 = arith.constant 0 : i32
    %c0_i32_0 = arith.constant 0 : i32
    %c0_i32_1 = arith.constant 0 : i32
    return %c0_i32, %c0_i32_0 : i32, i32
  }
  func.func @transform_5(%arg0: i32) -> (i32, i32, i32) {
    %c0_i32 = arith.constant 0 : i32
    %c0_i32_0 = arith.constant 0 : i32
    %c0_i32_1 = arith.constant 0 : i32
    return %arg0, %c0_i32, %c0_i32_0 : i32, i32, i32
  }
}

</mosaic_0001>

<bundles_post_ra>
// kernel: mha_forward.1
= control target key start
LH: loop header
LB: loop body
LE: loop exit
PB: predicated region body
PF: predicated region fallthrough
CT: control target
= control target key end

     0   :  { %10 = vsyncpa [#allocation3], 0  ;;  %s2475_s0 = inlined_call_operand.vmem [shape: f32[2,16,128], index: 0, kind: input, shape index: {}]   ;;  %s2476_s1 = inlined_call_operand.vmem [shape: f32[128,384], index: 1, kind: input, shape index: {}]   ;;  %s2477_s2 = inlined_call_operand.vmem [shape: f32[1,384], index: 2, kind: input, shape index: {}]   ;;  %s2478_s3 = inlined_call_operand.vmem [shape: f32[128,128], index: 3, kind: input, shape index: {}]   ;;  %s2479_s4 = inlined_call_operand.vmem [shape: f32[1,128], index: 4, kind: input, shape index: {}]   ;;  %s2480_s5 = inlined_call_operand.hbm [shape: f32[2,16,128], index: 5, kind: output, shape index: {}]  }
   0x1   :  { %12 = vsyncpa [#allocation3 + $0x1], 0  ;;  %s2044_s18 = smov 0   ;;  %s2046_s19 = smov 0  }
   0x2   :  { %s2048_s20 = smov 0   ;;  %s2050_s21 = smov 0  }
   0x3 LB: > { %s2065_s22 = sadd.s32 4294967295, %s2005_s21   ;;  %s1452_s23 = sadd.s32 4294967294, %s2005_s21   ;;  %s2005_s21 = sphi %s2050_s21, %s2488_s21   ;;  %s2001_s20 = sphi %s2048_s20, %s2487_s20   ;;  %s1997_s19 = sphi %s2046_s19, %s2486_s19   ;;  %s1993_s18 = sphi %s2044_s18, %s2485_s18  }
   0x4   : > { %s2069_s24 = sadd.s32 1, %s2005_s21   ;;  %s135_s25 = sadd.s32 1, %s2001_s20 }
   0x5   : > { %s132_s26 = ssub.s32 %s2005_s21, %s2069_s24  ;;  %p145_p0 = scmp.ne.s32.totalorder %s2001_s20, %s1997_s19 }
   0x6   : > { %p133_p1 = scmp.eq.s32.totalorder %s132_s26, 0  ;;  %p146_p2 = scmp.eq.s32.totalorder %s2065_s22, 1 }
   0x7   : > { %p151_p3 = scmp.ne.s32.totalorder %s1997_s19, %s1993_s18  ;;  %p152_p4 = scmp.eq.s32.totalorder %s1452_s23, 1 }
   0x8   : > { %s2080_s27 = scalar_select %p133_p1, %s2001_s20, %s135_s25  }
   0x9   : > { %p2082_p5 = por %p146_p2, %p145_p0  ;;  %p2086_p6 = por %p152_p4, %p151_p3 }
   0xa   : > { %p1455_p7 = scmp.ge.s32.totalorder %s2005_s21, 1  ;;  %p190_p8 = scmp.lt.s32.totalorder %s2005_s21, 3 }
   0xc   : > { %p191_p9 = pnand %p1455_p7, %p190_p8 }
   0xd   : > { %v226_v0 = vld [vmem:[%s2476_s1 + $0x8] sm:$0xff] (!%p191_p9)  ;;  %v229_v1 = vld [vmem:[%s2476_s1 + $0x20] sm:$0xff] (!%p191_p9)  ;;  %p218_p10 = scmp.lt.s32.totalorder (!%p191_p9), %s2065_s22, 1  ;;  %v228_v4 = vld [vmem:[%s2476_s1 + $0x18] sm:$0xff] (!%p191_p9)  ;;  %v2007_v7 = vmov (!%p191_p9), 0.0   ;;  %vm442_vm0 = vcmask (!%p191_p9), 261120  }
   0xe   : > { %194 = sbr.rel (%p191_p9) target bundleno = 2472 (0x9a8), region = 40  ;;  %v225_v2 = vld [vmem:[%s2476_s1] sm:$0xff] (!%p191_p9)  ;;  %v1685_v3 = vpack.c.bf16 (!%p191_p9), %v229_v1, %v226_v0  ;;  %v232_v5 = vld [vmem:[%s2476_s1 + $0x38] sm:$0xff] (!%p191_p9)  ;;  %v235_v6 = vld [vmem:[%s2476_s1 + $0x50] sm:$0xff] (!%p191_p9)  ;;  %354 = vmatprep.mubr.f32.mxu0 (!%p191_p9), %v2007_v7  ;;  %s2009_s16 = smov (!%p191_p9), 96   ;;  %vm532_vm2 = vcmask (!%p191_p9), 130048  }
   0xf   : > { %v1687_v8 = vpack.c.bf16 (!%p191_p9), %v228_v4, %v225_v2  ;;  %v1689_v9 = vpack.c.bf16 (!%p191_p9), %v235_v6, %v232_v5  ;;  %v231_v10 = vld [vmem:[%s2476_s1 + $0x30] sm:$0xff] (!%p191_p9)  ;;  %v234_v11 = vld [vmem:[%s2476_s1 + $0x48] sm:$0xff] (!%p191_p9)  ;;  %v241_v13 = vld [vmem:[%s2476_s1 + $0x80] sm:$0xff] (!%p191_p9)  ;;  %s2010_s17 = smov (!%p191_p9), 32   ;;  %vm1270_vm3 = vcmask (!%p191_p9), 523264   ;;  %vm1273_vm4 = vcmask (!%p191_p9), 785408  }
  0x10   : > { %v238_v12 = vld [vmem:[%s2476_s1 + $0x68] sm:$0xff] (!%p191_p9)  ;;  %1686 = vmatprep.subr.bf16.mxu0 (!%p191_p9), %v1685_v3  ;;  %v1691_v14 = vpack.c.bf16 (!%p191_p9), %v234_v11, %v231_v10  ;;  %v237_v16 = vld [vmem:[%s2476_s1 + $0x60] sm:$0xff] (!%p191_p9)  ;;  %v240_v17 = vld [vmem:[%s2476_s1 + $0x78] sm:$0xff] (!%p191_p9)  ;;  %s1490_s13 = sshll.u32 (!%p191_p9), %s2065_s22, 8 }
  0x11   : > { %1688 = vmatpush1.bf16.msra.mxu0 (!%p191_p9), %v1687_v8  ;;  %v1693_v15 = vpack.c.bf16 (!%p191_p9), %v241_v13, %v238_v12  ;;  %v244_v18 = vld [vmem:[%s2476_s1 + $0x98] sm:$0xff] (!%p191_p9)  ;;  %v247_v19 = vld [vmem:[%s2476_s1 + $0xb0] sm:$0xff] (!%p191_p9)  ;;  %v1695_v20 = vpack.c.bf16 (!%p191_p9), %v240_v17, %v237_v16  ;;  %v246_v23 = vld [vmem:[%s2476_s1 + $0xa8] sm:$0xff] (!%p191_p9)  ;;  %v275_v12 = vlaneseq (!%p191_p9)  ;;  %s2432_s15 = scalar_lea.hbm (!%p191_p9), %s2480_s5, %s1490_s13 }
  0x12   : > { %1690 = vmatprep.subr.bf16.mxu0 (!%p191_p9), %v1689_v9  ;;  %v1697_v21 = vpack.c.bf16 (!%p191_p9), %v247_v19, %v244_v18  ;;  %v243_v22 = vld [vmem:[%s2476_s1 + $0x90] sm:$0xff] (!%p191_p9)  ;;  %v250_v24 = vld [vmem:[%s2476_s1 + $0xc8] sm:$0xff] (!%p191_p9)  ;;  %v253_v25 = vld [vmem:[%s2476_s1 + $0xe0] sm:$0xff] (!%p191_p9) }
  0x13   : > { %v227_v27 = vld [vmem:[%s2476_s1 + $0x10] sm:$0xff] (!%p191_p9)  ;;  %v230_v28 = vld [vmem:[%s2476_s1 + $0x28] sm:$0xff] (!%p191_p9)  ;;  %v1699_v29 = vpack.c.bf16 (!%p191_p9), %v246_v23, %v243_v22  ;;  %v249_v30 = vld [vmem:[%s2476_s1 + $0xc0] sm:$0xff] (!%p191_p9)  ;;  %v1701_v34 = vpack.c.bf16 (!%p191_p9), %v253_v25, %v250_v24  ;;  %v276_v13 = vshrl.u32 (!%p191_p9), %v275_v12, 7 }
  0x14   : > { %v1717_v31 = vpack.c.bf16 (!%p191_p9), %v230_v28, %v227_v27  ;;  %v233_v32 = vld [vmem:[%s2476_s1 + $0x40] sm:$0xff] (!%p191_p9)  ;;  %v236_v33 = vld [vmem:[%s2476_s1 + $0x58] sm:$0xff] (!%p191_p9)  ;;  %v239_v37 = vld [vmem:[%s2476_s1 + $0x70] sm:$0xff] (!%p191_p9) }
  0x15   : > { %s219_s7 = scalar_select %p218_p10, %s2065_s22, 1  ;;  %1692 = vmatpush1.bf16.msra.mxu0 %v1691_v14  ;;  %v252_v35 = vld [vmem:[%s2476_s1 + $0xd8] sm:$0xff]  ;;  %v1721_v36 = vpack.c.bf16 %v236_v33, %v233_v32  ;;  %v242_v38 = vld [vmem:[%s2476_s1 + $0x88] sm:$0xff]  ;;  %v259_v40 = vld [vmem:[%s2476_s1 + $0x110] sm:$0xff]  ;;  %v277_v14 = vsub.s32 0, %v276_v13  ;;  %v281_v17 = vsub.s32 1, %v276_v13 }
  0x16   : > { %1694 = vmatprep.subr.bf16.mxu0 %v1693_v15  ;;  %v256_v39 = vld [vmem:[%s2476_s1 + $0xf8] sm:$0xff]  ;;  %1718 = vmatprep.subr.bf16.mxu1 %v1717_v31  ;;  %v1703_v41 = vpack.c.bf16 %v252_v35, %v249_v30  ;;  %v255_v42 = vld [vmem:[%s2476_s1 + $0xf0] sm:$0xff]  ;;  %v1725_v43 = vpack.c.bf16 %v242_v38, %v239_v37  ;;  %v258_v45 = vld [vmem:[%s2476_s1 + $0x108] sm:$0xff]  ;;  %s2011_s22 = smov [#allocation2]  }
  0x17   : > { %s1489_s10 = sshll.u32 %s219_s7, 4  ;;  %1720 = vmatpush3.bf16.msra.mxu1 %v1717_v31  ;;  %v1705_v44 = vpack.c.bf16 %v259_v40, %v256_v39  ;;  %v245_v46 = vld [vmem:[%s2476_s1 + $0xa0] sm:$0xff]  ;;  %v248_v47 = vld [vmem:[%s2476_s1 + $0xb8] sm:$0xff]  ;;  %v262_v48 = vld [vmem:[%s2476_s1 + $0x128] sm:$0xff]  ;;  %v1707_v50 = vpack.c.bf16 %v258_v45, %v255_v42  ;;  %s1947_s26 = sshll.u32 %s2011_s22, 4  ;;  %s1948_s26 = int_to_ptr.vmem [resolvable:$false] %s1947_s26 }
  0x18   : > { %s2140_s30 = scalar_lea.vmem %s2475_s0, %s1489_s10  ;;  %1722 = vmatprep.subr.bf16.mxu1 %v1721_v36  ;;  %v265_v49 = vld [vmem:[%s2476_s1 + $0x140] sm:$0xff]  ;;  %v1729_v52 = vpack.c.bf16 %v248_v47, %v245_v46  ;;  %v264_v54 = vld [vmem:[%s2476_s1 + $0x138] sm:$0xff]  ;;  %v251_v55 = vld [vmem:[%s2476_s1 + $0xd0] sm:$0xff]  ;;  %s1949_s6 = scalar_lea.vmem %s1948_s26, 512 }
  0x19   : > { %v2155_v26 = vld [vmem:[%s2140_s30] sm:$0xff]  ;;  %1696 = vmatpush1.bf16.msra.mxu0 %v1695_v20  ;;  %v1709_v53 = vpack.c.bf16 %v265_v49, %v262_v48  ;;  %v254_v56 = vld [vmem:[%s2476_s1 + $0xe8] sm:$0xff]  ;;  %v268_v57 = vld [vmem:[%s2476_s1 + $0x158] sm:$0xff] }
  0x1a   : > { %1591 = vmatprep.mubr.f32.mxu1 %v2155_v26  ;;  %1698 = vmatprep.subr.bf16.mxu0 %v1697_v21  ;;  %v261_v51 = vld [vmem:[%s2476_s1 + $0x120] sm:$0xff]  ;;  %v271_v58 = vld [vmem:[%s2476_s1 + $0x170] sm:$0xff]  ;;  %v1733_v61 = vpack.c.bf16 %v254_v56, %v251_v55  ;;  %v270_v63 = vld [vmem:[%s2476_s1 + $0x168] sm:$0xff]  ;;  %v285_v21 = vsub.s32 2, %v276_v13 }
  0x1b   : > { %1724 = vmatpush3.bf16.msra.mxu1 %v1721_v36  ;;  %v1711_v59 = vpack.c.bf16 %v264_v54, %v261_v51  ;;  %v267_v60 = vld [vmem:[%s2476_s1 + $0x150] sm:$0xff]  ;;  %v1713_v62 = vpack.c.bf16 %v271_v58, %v268_v57  ;;  %v257_v0 = vld [vmem:[%s2476_s1 + $0x100] sm:$0xff]  ;;  %v260_v1 = vld [vmem:[%s2476_s1 + $0x118] sm:$0xff] }
  0x1c   : > { %1726 = vmatprep.subr.bf16.mxu1 %v1725_v43  ;;  %v1715_v2 = vpack.c.bf16 %v270_v63, %v267_v60  ;;  %v1737_v3 = vpack.c.bf16 %v260_v1, %v257_v0  ;;  %v263_v4 = vld [vmem:[%s2476_s1 + $0x130] sm:$0xff]  ;;  %v266_v5 = vld [vmem:[%s2476_s1 + $0x148] sm:$0xff]  ;;  %v269_v8 = vld [vmem:[%s2476_s1 + $0x160] sm:$0xff] }
  0x1d   : > { %1700 = vmatpush1.bf16.msra.mxu0 %v1699_v29  ;;  %v1741_v6 = vpack.c.bf16 %v266_v5, %v263_v4  ;;  %v272_v9 = vld [vmem:[%s2476_s1 + $0x178] sm:$0xff]  ;;  %v224_v10 = vld [vmem:[%s2140_s30 + $0x8] sm:$0xff]  ;;  %v273_v15 = vld [vmem:[%s2477_s2] sm:$0x7]  ;;  %s2008_s30 = smov 64  }
  0x1e   : > { %1702 = vmatprep.subr.bf16.mxu0 %v1701_v34  ;;  %v1745_v11 = vpack.c.bf16 %v272_v9, %v269_v8  ;;  %v278_v16 = vrot.slane %v273_v15, %v277_v14  ;;  %v282_v20 = vrot.slane %v273_v15, %v281_v17  ;;  %vm2260_vm1 = vmpackc.low %vm442_vm0, %vm442_vm0  ;;  %v286_v27 = vrot.slane %v273_v15, %v285_v21 }
  0x1f   : > { %1728 = vmatpush3.bf16.msra.mxu1 %v1725_v43 }
  0x20   : > { %1730 = vmatprep.subr.bf16.mxu1 %v1729_v52 }
  0x21   : > { %1704 = vmatpush1.bf16.msra.mxu0 %v1703_v41 }
  0x22   : > { %1706 = vmatprep.subr.bf16.mxu0 %v1705_v44 }
  0x23   : > { %1732 = vmatpush3.bf16.msra.mxu1 %v1729_v52 }
  0x24   : > { %1734 = vmatprep.subr.bf16.mxu1 %v1733_v61 }
  0x25   : > { %1708 = vmatpush1.bf16.msra.mxu0 %v1707_v50 }
  0x26   : > { %1710 = vmatprep.subr.bf16.mxu0 %v1709_v53 }
  0x27   : > { %1736 = vmatpush3.bf16.msra.mxu1 %v1733_v61 }
  0x28   : > { %1738 = vmatprep.subr.bf16.mxu1 %v1737_v3 }
  0x29   : > { %1712 = vmatpush1.bf16.msra.mxu0 %v1711_v59 }
  0x2a   : > { %1714 = vmatprep.subr.bf16.mxu0 %v1713_v62 }
  0x2b   : > { %1740 = vmatpush3.bf16.msra.mxu1 %v1737_v3 }
  0x2c   : > { %1742 = vmatprep.subr.bf16.mxu1 %v1741_v6 }
  0x2d   : > { %1716 = vmatpush1.bf16.msra.mxu0 %v1715_v2 }
  0x2f   : > { %1744 = vmatpush3.bf16.msra.mxu1 %v1741_v6 }
  0x30   : > { %355 = vmatmul.mubr.f32.vlgmr.msra.gmra.mrb[0].mxu0 %v2155_v26  ;;  %1746 = vmatprep.subr.bf16.mxu1 %v1745_v11 }
  0x31   : > { %360 = vmatprep.mubr.f32.mxu0 %v2007_v7 }
  0x33   : > { %1748 = vmatpush3.bf16.msra.mxu1 %v1745_v11 }
  0x34   : > { %361 = vmatmul.mubr.f32.gmra.mrb[2].mxu0 %v224_v10 }
  0x36   : > { %1592 = vmatmul.mubr.f32.vlgmr.msra.gmra.mrb[0].mxu1 %v224_v10 }
 0x103   : > { %v356_v18 = vpop.f32.mrb[0].mxu0 }
 0x104   : > { %v2254_v7 = vadd.f32 %v356_v18, %v278_v16  ;;  %v358_v19 = vpop.f32.mrb[1].mxu0 }
 0x105   : > { %v359_v24 = vadd.f32 %v358_v19, %v282_v20 }
 0x106   : > { %1598 = vmatprep.mubr.msk.f32.mxu1 %vm442_vm0, %v2254_v7 }
 0x107   : > { %v362_v22 = vpop.f32.mrb[2].mxu0 }
 0x108   : > { %v364_v23 = vpop.f32.mrb[3].mxu0  ;;  %v2280_v35 = vadd.f32 %v362_v22, %v278_v16 }
 0x109   : > { %v365_v25 = vadd.f32 %v364_v23, %v282_v20  ;;  %v1593_v30 = vpop.f32.mrb[0].mxu1 }
 0x10a   : > { %v2272_v31 = vadd.f32 %v1593_v30, %v286_v27  ;;  %v433_v32 = vpop.f32.mrb[1].mxu1 }
 0x10b   : > { %v2264_v28 = vpack.i.bf16 %v365_v25, %v359_v24  ;;  %v1749_v29 = vpack.c.bf16 %v365_v25, %v359_v24  ;;  %v2274_v33 = vadd.f32 %v433_v32, %v286_v27 }
 0x10d   : > { %1872 = vrot.lane.b32.xlu1 %v2264_v28, %s2008_s30  ;;  %1751 = vmatprep.subr.msk.bf16.mxu1 %vm2260_vm1, %v1749_v29  ;;  %v1755_v34 = vpack.c.bf16 %v2272_v31, %v2274_v33 }
 0x10e   : > { %1754 = vmatpush3.bf16.xpose.msk.msra.mxu1 %vm2260_vm1, %v1749_v29  ;;  %v2327_v29 = vpack.i.bf16 %v2272_v31, %v2274_v33 }
 0x10f   : > { %1756 = vmatprep.subr.bf16.mxu1 %v1755_v34 }
 0x111   : > { %636 = vrot.lane.b32.xlu1 %v2254_v7, %s2009_s16 }
 0x115   : > { %1599 = vmatmul.mubr.msk.f32.vlgmr.msra.gmra.mrb[2].mxu1 %vm442_vm0, %v2280_v35 }
 0x116   : > { %1758 = vmatpush3.bf16.msra.mxu1 %v1755_v34 }
 0x17f   : > { %v1873_v56 = vpop.permute.xlu1 %1872 }
 0x180   : > { %v1875_v62 = vunpack.i.h.bf16 %v1873_v56  ;;  %v1874_v63 = vunpack.i.l.bf16 %v1873_v56 }
 0x182   : > { %v1769_v2 = vpack.c.bf16 %v1875_v62, %v1874_v63 }
 0x183   : > { %v637_v57 = vpop.permute.xlu1 %636 }
 0x1e8   : > { %v1600_v36 = vpop.f32.mrb[2].mxu1 }
 0x1e9   : > { %v521_v37 = vpop.f32.mrb[3].mxu1  ;;  %v531_v39 = vmul.f32 0.17677669, %v1600_v36 }
 0x1ea   : > { %v530_v38 = vmul.f32 0.17677669, %v521_v37 }
 0x1eb   : > { %v536_v41 = vsel %vm532_vm2, %v531_v39, -inf }
 0x1ec   : > { %v533_v40 = vsel %vm532_vm2, %v530_v38, -inf }
 0x1ed   : > { %534 = vmax.xlane.f32.xlu0 %v533_v40 }
 0x1f1   : > { %537 = vmax.xlane.f32.xlu0 %v536_v41 }
 0x207   : > { %1867 = vrot.lane.b32.xlu0 %v2264_v28, %s2009_s16 }
 0x20b   : > { %840 = vrot.lane.b32.xlu0 %v2254_v7, %s2008_s30 }
 0x27a   : > { %v535_v42 = vpop.xlane.xlu0 %534 }
 0x27b   : > { %v539_v43 = vsub.f32 %v530_v38, %v535_v42 }
 0x27d   : > { %v541_v46 = vmul.f32 1.442695, %v539_v43 }
 0x27e   : > { %v538_v44 = vpop.xlane.xlu0 %537 }
 0x27f   : > { %v540_v45 = vsub.f32 %v531_v39, %v538_v44 }
 0x281   : > { %v543_v47 = vmul.f32 1.442695, %v540_v45 }
 0x282   : > { %v1868_v48 = vpop.permute.xlu0 %1867 }
 0x283   : > { %1911 = vpow2.f32 %v543_v47  ;;  %v1870_v49 = vunpack.i.h.bf16 %v1868_v48  ;;  %v1869_v50 = vunpack.i.l.bf16 %v1868_v48 }
 0x284   : > { %1913 = vpow2.f32 %v541_v46 }
 0x285   : > { %v1759_v51 = vpack.c.bf16 %v1870_v49, %v1869_v50 }
 0x286   : > { %v841_v4 = vpop.permute.xlu0 %840 }
 0x287   : > { %1761 = vmatprep.subr.msk.bf16.mxu1 %vm2260_vm1, %v1759_v51 }
 0x28d   : > { %v1912_v52 = vpop.eup %1911 }
 0x28e   : > { %v548_v53 = vsel %vm532_vm2, %v1912_v52, 0.0  ;;  %v1914_v54 = vpop.eup %1913 }
 0x28f   : > { %549 = vadd.xlane.f32.xlu1 %v548_v53  ;;  %v545_v55 = vsel %vm532_vm2, %v1914_v54, 0.0 }
 0x293   : > { %546 = vadd.xlane.f32.xlu1 %v545_v55 }
 0x2a4   : > { %638 = vrot.lane.b32.xlu1 %v2280_v35, %s2009_s16 }
 0x2a8   : > { %842 = vrot.lane.b32.xlu1 %v2280_v35, %s2008_s30 }
 0x31c   : > { %v550_v58 = vpop.xlane.xlu1 %549 }
 0x31d   : > { %1915 = vrcp.f32 %v550_v58 }
 0x320   : > { %v547_v59 = vpop.xlane.xlu1 %546 }
 0x321   : > { %1917 = vrcp.f32 %v547_v59 }
 0x324   : > { %v639_v3 = vpop.permute.xlu1 %638 }
 0x327   : > { %v1916_v60 = vpop.eup %1915 }
 0x328   : > { %v554_v1 = vmul.f32 %v1916_v60, %v1912_v52  ;;  %v843_v5 = vpop.permute.xlu1 %842 }
 0x32b   : > { %v1918_v61 = vpop.eup %1917 }
 0x32c   : > { %v552_v0 = vmul.f32 %v1918_v61, %v1914_v54 }
 0x32e   : > { %1605 = vmatprep.mubr.msk.f32.mxu1 %vm532_vm2, %v552_v0 }
 0x32f   : > { %1606 = vmatmul.mubr.msk.f32.vlgmr.msra.gmra.mrb[4].mxu1 %vm532_vm2, %v554_v1 }
 0x330   : > { %1764 = vmatpush3.bf16.xpose.msk.msra.mxu1 %vm2260_vm1, %v1759_v51  ;;  %1612 = vmatprep.mubr.msk.f32.mxu1 %vm442_vm0, %v637_v57 }
 0x331   : > { %1771 = vmatprep.subr.msk.bf16.mxu1 %vm2260_vm1, %v1769_v2 }
 0x337   : > { %1613 = vmatmul.mubr.msk.f32.vlgmr.msra.gmra.mrb[6].mxu1 %vm442_vm0, %v639_v3 }
 0x338   : > { %1774 = vmatpush3.bf16.xpose.msk.msra.mxu1 %vm2260_vm1, %v1769_v2  ;;  %1626 = vmatprep.mubr.msk.f32.mxu1 %vm442_vm0, %v841_v4 }
 0x33f   : > { %1627 = vmatmul.mubr.msk.f32.vlgmr.msra.gmra.mrb[8].mxu1 %vm442_vm0, %v843_v5 }
 0x402   : > { %v2310_v6 = vpop.f32.mrb[4].mxu1 }
 0x403   : > { %v2312_v8 = vpop.f32.mrb[5].mxu1 }
 0x40a   : > { %v1614_v9 = vpop.f32.mrb[6].mxu1 }
 0x40b   : > { %v718_v10 = vpop.f32.mrb[7].mxu1  ;;  %v728_v17 = vmul.f32 0.17677669, %v1614_v9 }
 0x40c   : > { %v727_v38 = vmul.f32 0.17677669, %v718_v10 }
 0x40d   : > { %v732_v18 = vsel %vm532_vm2, %v728_v17, -inf }
 0x40e   : > { %v729_v39 = vsel %vm532_vm2, %v727_v38, -inf }
 0x412   : > { %v1628_v11 = vpop.f32.mrb[8].mxu1 }
 0x413   : > { %v932_v12 = vmul.f32 0.17677669, %v1628_v11  ;;  %v922_v13 = vpop.f32.mrb[9].mxu1 }
 0x414   : > { %v931_v14 = vmul.f32 0.17677669, %v922_v13 }
 0x415   : > { %v936_v15 = vsel %vm532_vm2, %v932_v12, -inf }
 0x416   : > { %937 = vmax.xlane.f32.xlu1 %v936_v15  ;;  %v933_v16 = vsel %vm532_vm2, %v931_v14, -inf }
 0x417   : > { %934 = vmax.xlane.f32.xlu0 %v933_v16 }
 0x427   : > { %1882 = vrot.lane.b32.xlu1 %v2264_v28, %s2010_s17 }
 0x42b   : > { %1042 = vrot.lane.b32.xlu1 %v2254_v7, %s2010_s17 }
 0x42f   : > { %1044 = vrot.lane.b32.xlu1 %v2280_v35, %s2010_s17 }
 0x453   : > { %733 = vmax.xlane.f32.xlu1 %v732_v18 }
 0x4a3   : > { %v938_v19 = vpop.xlane.xlu1 %937 }
 0x4a4   : > { %v940_v20 = vsub.f32 %v932_v12, %v938_v19  ;;  %v935_v21 = vpop.xlane.xlu0 %934 }
 0x4a5   : > { %v939_v22 = vsub.f32 %v931_v14, %v935_v21 }
 0x4a6   : > { %v943_v23 = vmul.f32 1.442695, %v940_v20 }
 0x4a7   : > { %v941_v24 = vmul.f32 1.442695, %v939_v22  ;;  %v1883_v30 = vpop.permute.xlu1 %1882 }
 0x4a8   : > { %1919 = vpow2.f32 %v943_v23  ;;  %v1885_v43 = vunpack.i.h.bf16 %v1883_v30  ;;  %v1884_v44 = vunpack.i.l.bf16 %v1883_v30 }
 0x4a9   : > { %1921 = vpow2.f32 %v941_v24 }
 0x4aa   : > { %v1779_v48 = vpack.c.bf16 %v1885_v43, %v1884_v44  ;;  %v1282_v44 = vld [vmem:[%s2478_s3 + $0x30] sm:$0xff] }
 0x4ab   : > { %v1043_v32 = vpop.permute.xlu1 %1042 }
 0x4af   : > { %v1045_v34 = vpop.permute.xlu1 %1044 }
 0x4b2   : > { %v1920_v25 = vpop.eup %1919 }
 0x4b3   : > { %v948_v27 = vsel %vm532_vm2, %v1920_v25, 0.0  ;;  %v1922_v28 = vpop.eup %1921 }
 0x4b4   : > { %949 = vadd.xlane.f32.xlu0 %v948_v27  ;;  %v945_v7 = vsel %vm532_vm2, %v1922_v28, 0.0 }
 0x4b8   : > { %946 = vadd.xlane.f32.xlu0 %v945_v7 }
 0x4ce   : > { %1877 = vrot.lane.b32.xlu0 %v2327_v29, %s2008_s30 }
 0x4e0   : > { %v734_v35 = vpop.xlane.xlu1 %733 }
 0x4e1   : > { %v736_v36 = vsub.f32 %v728_v17, %v734_v35 }
 0x4e3   : > { %v739_v37 = vmul.f32 1.442695, %v736_v36 }
 0x4e5   : > { %1923 = vpow2.f32 %v739_v37  ;;  %v1276_v37 = vld [vmem:[%s2478_s3] sm:$0xff] }
 0x4ed   : > { %730 = vmax.xlane.f32.xlu0 %v729_v39  ;;  %v1278_v39 = vld [vmem:[%s2478_s3 + $0x10] sm:$0xff] }
 0x4ef   : > { %v2332_v40 = vpop.eup %1923 }
 0x4f0   : > { %v744_v31 = vsel %vm532_vm2, %v2332_v40, 0.0 }
 0x4f1   : > { %745 = vadd.xlane.f32.xlu1 %v744_v31  ;;  %v1279_v31 = vld [vmem:[%s2478_s3 + $0x18] sm:$0xff] }
 0x541   : > { %v950_v33 = vpop.xlane.xlu0 %949 }
 0x542   : > { %1925 = vrcp.f32 %v950_v33  ;;  %v1793_v33 = vpack.c.bf16 %v1279_v31, %v1278_v39 }
 0x545   : > { %v947_v41 = vpop.xlane.xlu0 %946 }
 0x546   : > { %1927 = vrcp.f32 %v947_v41  ;;  %v1280_v41 = vld [vmem:[%s2478_s3 + $0x20] sm:$0xff] }
 0x549   : > { %v1878_v42 = vpop.permute.xlu0 %1877 }
 0x54a   : > { %v1880_v45 = vunpack.i.h.bf16 %v1878_v42  ;;  %v1879_v46 = vunpack.i.l.bf16 %v1878_v42  ;;  %v1281_v42 = vld [vmem:[%s2478_s3 + $0x28] sm:$0xff] }
 0x54b   : > { %v1797_v43 = vpack.c.bf16 %v1281_v42, %v1280_v41 }
 0x54c   : > { %v1775_v47 = vpack.c.bf16 %v1880_v45, %v1879_v46  ;;  %v1926_v49 = vpop.eup %1925  ;;  %v1283_v45 = vld [vmem:[%s2478_s3 + $0x38] sm:$0xff] }
 0x54d   : > { %v954_v52 = vmul.f32 %v1926_v49, %v1920_v25  ;;  %v1801_v46 = vpack.c.bf16 %v1283_v45, %v1282_v44 }
 0x54e   : > { %1776 = vmatprep.subr.bf16.mxu1 %v1775_v47 }
 0x54f   : > { %1778 = vmatpush3.bf16.msra.mxu1 %v1775_v47  ;;  %v1284_v47 = vld [vmem:[%s2478_s3 + $0x40] sm:$0xff] }
 0x550   : > { %v1928_v50 = vpop.eup %1927  ;;  %1781 = vmatprep.subr.msk.bf16.mxu1 %vm2260_vm1, %v1779_v48 }
 0x551   : > { %v952_v51 = vmul.f32 %v1928_v50, %v1922_v28  ;;  %v1286_v50 = vld [vmem:[%s2478_s3 + $0x50] sm:$0xff] }
 0x553   : > { %1633 = vmatprep.mubr.msk.f32.mxu1 %vm532_vm2, %v952_v51  ;;  %v1287_v51 = vld [vmem:[%s2478_s3 + $0x58] sm:$0xff] }
 0x554   : > { %1634 = vmatmul.mubr.msk.f32.vlgmr.msra.gmra.mrb[10].mxu1 %vm532_vm2, %v954_v52  ;;  %v1809_v52 = vpack.c.bf16 %v1287_v51, %v1286_v50 }
 0x555   : > { %1640 = vmatprep.mubr.msk.f32.mxu1 %vm442_vm0, %v1043_v32 }
 0x558   : > { %1784 = vmatpush3.bf16.xpose.msk.msra.mxu1 %vm2260_vm1, %v1779_v48  ;;  %v1285_v48 = vld [vmem:[%s2478_s3 + $0x48] sm:$0xff] }
 0x559   : > { %v1805_v49 = vpack.c.bf16 %v1285_v48, %v1284_v47 }
 0x55f   : > { %1641 = vmatmul.mubr.msk.f32.vlgmr.msra.gmra.mrb[12].mxu1 %vm442_vm0, %v1045_v34 }
 0x57a   : > { %v731_v53 = vpop.xlane.xlu0 %730 }
 0x57b   : > { %v735_v56 = vsub.f32 %v727_v38, %v731_v53  ;;  %v1277_v38 = vld [vmem:[%s2478_s3 + $0x8] sm:$0xff]  ;;  %v1288_v53 = vld [vmem:[%s2478_s3 + $0x60] sm:$0xff] }
 0x57d   : > { %v737_v58 = vmul.f32 1.442695, %v735_v56  ;;  %v1289_v56 = vld [vmem:[%s2478_s3 + $0x68] sm:$0xff] }
 0x57e   : > { %v746_v18 = vpop.xlane.xlu1 %745 }
 0x57f   : > { %1929 = vpow2.f32 %v737_v58  ;;  %v1813_v58 = vpack.c.bf16 %v1289_v56, %v1288_v53 }
 0x589   : > { %v1930_v0 = vpop.eup %1929 }
 0x58a   : > { %v741_v1 = vsel %vm532_vm2, %v1930_v0, 0.0 }
 0x627   : > { %v2344_v54 = vpop.f32.mrb[10].mxu1 }
 0x628   : > { %v2346_v55 = vpop.f32.mrb[11].mxu1 }
 0x629   : > { %v1901_v57 = vpack.i.bf16 %v2344_v54, %v2346_v55 }
 0x632   : > { %v1642_v59 = vpop.f32.mrb[12].mxu1 }
 0x633   : > { %v1124_v60 = vpop.f32.mrb[13].mxu1  ;;  %v1134_v62 = vmul.f32 0.17677669, %v1642_v59  ;;  %v1290_v59 = vld [vmem:[%s2478_s3 + $0x70] sm:$0xff] }
 0x634   : > { %v1133_v61 = vmul.f32 0.17677669, %v1124_v60  ;;  %v1291_v60 = vld [vmem:[%s2478_s3 + $0x78] sm:$0xff] }
 0x635   : > { %v1138_v63 = vsel %vm532_vm2, %v1134_v62, -inf }
 0x636   : > { %v1135_v26 = vsel %vm532_vm2, %v1133_v61, -inf }
 0x637   : > { %1136 = vmax.xlane.f32.xlu0 %v1135_v26 }
 0x63b   : > { %1139 = vmax.xlane.f32.xlu0 %v1138_v63 }
 0x63f   : > { %742 = vadd.xlane.f32.xlu0 %v741_v1 }
 0x6c4   : > { %v1137_v2 = vpop.xlane.xlu0 %1136 }
 0x6c5   : > { %v1141_v3 = vsub.f32 %v1133_v61, %v1137_v2  ;;  %v1817_v61 = vpack.c.bf16 %v1291_v60, %v1290_v59 }
 0x6c7   : > { %v1143_v4 = vmul.f32 1.442695, %v1141_v3 }
 0x6c8   : > { %v1140_v5 = vpop.xlane.xlu0 %1139 }
 0x6c9   : > { %1931 = vpow2.f32 %v1143_v4  ;;  %v1142_v9 = vsub.f32 %v1134_v62, %v1140_v5 }
 0x6cb   : > { %v1145_v10 = vmul.f32 1.442695, %v1142_v9 }
 0x6cc   : > { %v743_v11 = vpop.xlane.xlu0 %742 }
 0x6cd   : > { %1933 = vpow2.f32 %v1145_v10 }
 0x6ce   : > { %1935 = vrcp.f32 %v743_v11 }
 0x6cf   : > { %1937 = vrcp.f32 %v746_v18  ;;  %v1483_v18 = vld [vmem:[%s2479_s4] ss:$0 sm:$0xff] }
 0x6d3   : > { %v1932_v12 = vpop.eup %1931 }
 0x6d4   : > { %v1147_v13 = vsel %vm532_vm2, %v1932_v12, 0.0 }
 0x6d5   : > { %1148 = vadd.xlane.f32.xlu0 %v1147_v13 }
 0x6d7   : > { %v1934_v14 = vpop.eup %1933 }
 0x6d8   : > { %v1936_v15 = vpop.eup %1935  ;;  %v1150_v16 = vsel %vm532_vm2, %v1934_v14, 0.0 }
 0x6d9   : > { %1151 = vadd.xlane.f32.xlu1 %v1150_v16  ;;  %v748_v17 = vmul.f32 %v1936_v15, %v1930_v0  ;;  %v1938_v25 = vpop.eup %1937 }
 0x6da   : > { %v750_v32 = vmul.f32 %v1938_v25, %v2332_v40  ;;  %v1789_v40 = vpack.c.bf16 %v1277_v38, %v1276_v37 }
 0x6db   : > { %1619 = vmatprep.mubr.msk.f32.mxu0 %vm532_vm2, %v748_v17 }
 0x6ea   : > { %1892 = vrot.lane.b32.xlu1 %v2327_v29, %s2010_s17 }
 0x6eb   : > { %1887 = vrot.lane.b32.xlu0 %v2327_v29, %s2009_s16 }
 0x762   : > { %v1149_v19 = vpop.xlane.xlu0 %1148 }
 0x763   : > { %1939 = vrcp.f32 %v1149_v19 }
 0x766   : > { %v1152_v20 = vpop.xlane.xlu1 %1151  ;;  %v1888_v21 = vpop.permute.xlu0 %1887 }
 0x767   : > { %1941 = vrcp.f32 %v1152_v20  ;;  %v1890_v22 = vunpack.i.h.bf16 %v1888_v21  ;;  %v1889_v23 = vunpack.i.l.bf16 %v1888_v21 }
 0x769   : > { %v1765_v24 = vpack.c.bf16 %v1890_v22, %v1889_v23 }
 0x76a   : > { %v1893_v27 = vpop.permute.xlu1 %1892 }
 0x76b   : > { %v1895_v28 = vunpack.i.h.bf16 %v1893_v27  ;;  %v1894_v7 = vunpack.i.l.bf16 %v1893_v27  ;;  %1766 = vmatprep.subr.bf16.mxu0 %v1765_v24 }
 0x76c   : > { %1768 = vmatpush3.bf16.msra.mxu0 %v1765_v24 }
 0x76d   : > { %v1940_v30 = vpop.eup %1939  ;;  %v1785_v29 = vpack.c.bf16 %v1895_v28, %v1894_v7 }
 0x76e   : > { %v1154_v34 = vmul.f32 %v1940_v30, %v1932_v12 }
 0x76f   : > { %1620 = vmatmul.mubr.msk.f32.vlgmr.msra.gmra.mrb[4].mxu0 %vm532_vm2, %v750_v32  ;;  %1786 = vmatprep.subr.bf16.mxu0 %v1785_v29 }
 0x770   : > { %1788 = vmatpush3.bf16.msra.mxu0 %v1785_v29  ;;  %1647 = vmatprep.mubr.msk.f32.mxu0 %vm532_vm2, %v1154_v34 }
 0x771   : > { %v1942_v35 = vpop.eup %1941  ;;  %1790 = vmatprep.subr.bf16.mxu0 %v1789_v40 }
 0x772   : > { %v1156_v36 = vmul.f32 %v1942_v35, %v1934_v14 }
 0x774   : > { %1648 = vmatmul.mubr.msk.f32.vlgmr.msra.gmra.mrb[6].mxu0 %vm532_vm2, %v1156_v36 }
 0x775   : > { %1792 = vmatpush3.bf16.msra.mxu0 %v1789_v40 }
 0x776   : > { %1794 = vmatprep.subr.bf16.mxu0 %v1793_v33 }
 0x779   : > { %1796 = vmatpush3.bf16.msra.mxu0 %v1793_v33 }
 0x77a   : > { %1798 = vmatprep.subr.bf16.mxu0 %v1797_v43 }
 0x77d   : > { %1800 = vmatpush3.bf16.msra.mxu0 %v1797_v43 }
 0x77e   : > { %1802 = vmatprep.subr.bf16.mxu0 %v1801_v46 }
 0x781   : > { %1804 = vmatpush3.bf16.msra.mxu0 %v1801_v46 }
 0x782   : > { %1806 = vmatprep.subr.bf16.mxu0 %v1805_v49 }
 0x785   : > { %1808 = vmatpush3.bf16.msra.mxu0 %v1805_v49 }
 0x786   : > { %1810 = vmatprep.subr.bf16.mxu0 %v1809_v52 }
 0x789   : > { %1812 = vmatpush3.bf16.msra.mxu0 %v1809_v52 }
 0x78a   : > { %1814 = vmatprep.subr.bf16.mxu0 %v1813_v58 }
 0x78d   : > { %1816 = vmatpush3.bf16.msra.mxu0 %v1813_v58 }
 0x78e   : > { %1818 = vmatprep.subr.bf16.mxu0 %v1817_v61 }
 0x791   : > { %1820 = vmatpush3.bf16.msra.mxu0 %v1817_v61 }
 0x842   : > { %v1621_v62 = vpop.f32.mrb[4].mxu0 }
 0x843   : > { %v831_v26 = vpop.f32.mrb[5].mxu0 }
 0x844   : > { %v1896_v63 = vpack.i.bf16 %v1621_v62, %v831_v26 }
 0x846   : > { %1897 = vrot.lane.b32.xlu1 %v1896_v63, %s2010_s17 }
 0x847   : > { %v1649_v0 = vpop.f32.mrb[6].mxu0 }
 0x848   : > { %v1235_v1 = vpop.f32.mrb[7].mxu0 }
 0x849   : > { %v1906_v2 = vpack.i.bf16 %v1649_v0, %v1235_v1 }
 0x84a   : > { %1902 = vrot.lane.b32.xlu1 %v1901_v57, %s2008_s30  ;;  %s215_s30 = sand.u32 1, %s1997_s19  }
 0x84b   : > { %1907 = vrot.lane.b32.xlu0 %v1906_v2, %s2009_s16  ;;  %s1456_s16 = sshll.u32 %s215_s30, 4  ;;  %s2434_s23 = scalar_lea.sflag [#allocation3], %s215_s30 }
 0x84c   : > { %s217_s11 = scalar_lea.vmem [#allocation2], %s1456_s16 }
 0x84d   : > { %s1390_s12 = sshll.u32 %s217_s11, 4  ;;  %s2427_s12 = int_to_ptr.vmem [resolvable:$true] %s1390_s12 }
 0x84e   : > { %s1943_s25 = scalar_lea.vmem %s2427_s12, 256  ;;  %p1950_p0 = scmp.lt.s32.totalorder %s2427_s12, %s1948_s26 }
 0x84f   : > { %p1944_p11 = scmp.ne.s32.totalorder %s2427_s12, %s1943_s25  ;;  %p1951_p1 = scmp.lt.s32.totalorder %s1949_s6, %s1943_s25 }
 0x851   : > { %p1945_p12 = pnand %p1944_p11, %p2082_p5  ;;  %p1952_p2 = por %p1951_p1, %p1950_p0 }
 0x853   : > { %p1946_p13 = pneg %p1945_p12 }
 0x855   : > { %p1953_p3 = pnand %p1952_p2, %p1946_p13 }
 0x8b8   : > { %v1898_v3 = vpop.permute.xlu1 %1897 }
 0x8b9   : > { %v1900_v4 = vunpack.i.h.bf16 %v1898_v3  ;;  %v1899_v5 = vunpack.i.l.bf16 %v1898_v3 }
 0x8bb   : > { %v1269_v13 = vsel %vm442_vm0, %v2310_v6, %v1900_v4  ;;  %v1268_v54 = vsel %vm442_vm0, %v2312_v8, %v1899_v5 }
 0x8bc   : > { %v1903_v9 = vpop.permute.xlu1 %1902 }
 0x8bd   : > { %v1905_v10 = vunpack.i.h.bf16 %v1903_v9  ;;  %v1904_v11 = vunpack.i.l.bf16 %v1903_v9  ;;  %v1908_v12 = vpop.permute.xlu0 %1907 }
 0x8be   : > { %v1910_v14 = vunpack.i.h.bf16 %v1908_v12  ;;  %v1909_v15 = vunpack.i.l.bf16 %v1908_v12 }
 0x8bf   : > { %v1272_v55 = vsel %vm1270_vm3, %v1269_v13, %v1905_v10  ;;  %v1271_v57 = vsel %vm1270_vm3, %v1268_v54, %v1904_v11 }
 0x8c0   : > { %v1274_v16 = vsel %vm1273_vm4, %v1271_v57, %v1909_v15  ;;  %v1275_v17 = vsel %vm1273_vm4, %v1272_v55, %v1910_v14 }
 0x8c1   : > { %1682 = vmatprep.mubr.f32.mxu0 %v1274_v16 }
 0x8c2   : > { %1683 = vmatmul.mubr.f32.vlgmr.msra.gmra.mrb[8].mxu0 %v1275_v17 }
 0x995   : > { %v1684_v6 = vpop.f32.mrb[8].mxu0 }
 0x996   : > { %v1371_v19 = vadd.f32 %v1684_v6, %v1483_v18  ;;  %v1365_v8 = vpop.f32.mrb[9].mxu0 }
 0x997   : > { %v1366_v20 = vadd.f32 %v1483_v18, %v1365_v8 }
 0x998   : > { %1375 = vst [vmem:[%s217_s11 + $0x8] sm:$0xff] %v1371_v19 }
 0x999   : > { %1374 = vst [vmem:[%s217_s11] sm:$0xff] %v1366_v20 }
 0x99a   : > { %1956 = shalt.err (!%p1953_p3)
}
 0x99b   : > { %s1957_s7 = scalar_lea.hbm %s2432_s15, 256  ;;  %s1961_s16 = scalar_lea.hbm %s2480_s5, 512 }
 0x99c   : > { %p1958_p4 = scmp.ne.s32.totalorder %s2432_s15, %s1957_s7  ;;  %p1962_p9 = scmp.lt.u32.totalorder %s2432_s15, %s2480_s5 }
 0x99d   : > { %p1963_p10 = scmp.lt.u32.totalorder %s1961_s16, %s1957_s7  ;;  %p1965_p12 = scmp.lt.u32.totalorder %s1957_s7, %s2432_s15 }
 0x99e   : > { %p1959_p7 = pnand %p1958_p4, %p2082_p5 }
 0x99f   : > { %p1964_p11 = por %p1963_p10, %p1962_p9 }
 0x9a0   : > { %p1960_p8 = pneg %p1959_p7 }
 0x9a1   : > { %p1966_p13 = por %p1965_p12, %p1964_p11 }
 0x9a3   : > { %p1967_p0 = pnand %p1966_p13, %p1960_p8 }
 0x9a5   : > { %1970 = shalt.err (!%p1967_p0)
}
 0x9a6   : > { %s2012_s11 = smov 128   ;;  %s2013_s13 = smov 8  }
 0x9a7   : > { %1821 = dma.vmem_to_hbm [thread:$0]  (%p2082_p5), %s2427_s12, 256, %s2432_s15, %s2434_s23, %s2012_s11, %s2012_s11, %s2013_s13  }
 0x9a8 PF: > { %p1827_p1 = scmp.ge.s32.totalorder %s2005_s21, 2  ;;  %s1405_s10 = sand.u32 1, %s1993_s18  }
 0x9a9   : > { %s1406_s14 = scalar_lea.sflag [#allocation3], %s1405_s10 }
 0x9aa   : > { %p1824_p2 = pnand %p1827_p1, %p2086_p6 }
 0x9ac   : > { %1988 = dma.done.wait (!%p1824_p2), %s1406_s14, 256  }
 0x9ad   : > { %1990 = vsyncadd (!%p1824_p2), %s1406_s14, 4294967040  ;;  %p15_p3 = scmp.ge.s32.totalorder %s2069_s24, 4   ;;  %s2485_s18 = smov %s1997_s19 }
 0x9ae   : > { %s2486_s19 = smov %s2001_s20  ;;  %s2487_s20 = smov %s2080_s27 }
 0x9af   : > { %s2488_s21 = smov %s2069_s24  ;;  %17 = sbr.rel (!%p15_p3) target bundleno = 3 (0x3), region = 75 }
 0x9b6   :  { %1411 = vsyncpa [#allocation3], 1 }
 0x9b7   :  { %1413 = vsyncpa [#allocation3 + $0x1], 1 }

</bundles_post_ra>
